<compile_context>
chip_gen: v5e
topology: v5e:2x2
jax: 0.10.0
libtpu: 0.0.40
codegen_flags: <defaults>
</compile_context>

<pallas_src>
import functools

import jax
import jax.numpy as jnp
from jax.experimental import pallas as pl
from jax.experimental.pallas import tpu as pltpu


# ------------------------------ tiling helpers ------------------------------
_TARGET_GRID_STEPS = 8  # keep the grid splittable/balanced across v7x's 2 TCs


def _vmem_capacity_bytes():
    try:
        info = pltpu.get_tpu_info()
        cap = getattr(info, "vmem_capacity_bytes", None)
        if cap:
            return int(cap)
    except Exception:
        pass
    return 64 * 1024 * 1024  # v7x-safe fallback


# Scoped VMEM limit and double-buffered live-tile budget, per generation:
#   v7x (64 MiB physical)  -> limit 48 MiB, tile budget 32 MiB
#   v5e/v6e (128 MiB)      -> limit 96 MiB, tile budget 64 MiB
_VMEM_LIMIT = (_vmem_capacity_bytes() * 3) // 4
_VMEM_TILE_BUDGET = (_VMEM_LIMIT * 2) // 3


def _cdiv(a, b):
    return (a + b - 1) // b


def _round_up(a, b):
    return _cdiv(a, b) * b


def _row_align(itemsize):
    # sublane packing: f32 -> 8 rows, bf16 -> 16, int8/fp8 -> 32
    return max(8, 32 // max(int(itemsize), 1))


def _choose_row_tile(n, live_bytes_per_row, align):
    """Largest row tile whose live bytes (double-buffered I/O + f32 working
    copies, already folded into live_bytes_per_row) fit the VMEM budget, kept
    to a multiple of `align` and small enough that the grid still has about
    _TARGET_GRID_STEPS steps (so v7x megacore can split the work evenly)."""
    tr = _VMEM_TILE_BUDGET // max(live_bytes_per_row, 1)
    tr = max(align, (tr // align) * align)
    max_for_steps = _round_up(_cdiv(n, _TARGET_GRID_STEPS), align)
    tr = max(align, min(tr, max_for_steps))
    return tr


def _cparams():
    # TODO(synk): on v7x, verify in xprof that the single row axis actually
    # splits across both TensorCores; if not, switch to pltpu.CORE_PARALLEL.
    return pltpu.CompilerParams(
        dimension_semantics=("parallel",),
        vmem_limit_bytes=_VMEM_LIMIT,
    )


# --------------------------------- kernels ----------------------------------
def _minmax_scale_zero(x, *, maxq, clip_ratio, sym):
    """Per-row min/max in the native dtype; scale/zero math on (tr,1) in f32."""
    xmin = jnp.min(x, axis=-1, keepdims=True).astype(jnp.float32)
    xmax = jnp.max(x, axis=-1, keepdims=True).astype(jnp.float32)
    xmin = jnp.minimum(xmin, 0.0) * clip_ratio
    xmax = jnp.maximum(xmax, 0.0) * clip_ratio
    if sym:
        xmax = jnp.maximum(jnp.abs(xmin), xmax)
        scale = jnp.where(xmax == 0.0, 1.0, xmax / maxq)
        zero = jnp.zeros_like(scale)
    else:
        both = (xmin == 0.0) & (xmax == 0.0)
        xmin = jnp.where(both, -1.0, xmin)
        xmax = jnp.where(both, 1.0, xmax)
        scale = (xmax - xmin) / maxq
        zero = jnp.round(-xmin / scale)
    return scale, zero


def _find_params_kernel(x_ref, scale_ref, zero_ref, *, maxq, clip_ratio, sym):
    scale, zero = _minmax_scale_zero(
        x_ref[...], maxq=maxq, clip_ratio=clip_ratio, sym=sym
    )
    scale_ref[...] = scale
    zero_ref[...] = zero


def _fake_quant_sym_kernel(x_ref, scale_ref, out_ref, *, maxq):
    x = x_ref[...].astype(jnp.float32)          # single astype; quant math in f32
    scale = scale_ref[...]                      # (tr, 1) f32
    inv = 1.0 / scale                           # per-row divide only (exact; approx
                                                # rcp could flip round() ties)
    q = jnp.clip(jnp.round(x * inv), -(maxq + 1.0), maxq)
    out_ref[...] = (scale * q).astype(out_ref.dtype)


def _fake_quant_asym_kernel(x_ref, scale_ref, zero_ref, out_ref, *, maxq):
    x = x_ref[...].astype(jnp.float32)
    scale = scale_ref[...]                      # (tr, 1) f32
    zero = zero_ref[...]                        # (tr, 1) f32
    inv = 1.0 / scale
    q = jnp.clip(jnp.round(x * inv) + zero, 0.0, maxq)
    out_ref[...] = (scale * (q - zero)).astype(out_ref.dtype)


def _fused_quant_kernel(x_ref, out_ref, scale_ref, zero_ref, *, maxq, clip_ratio, sym):
    """find_params + fake quant-dequant in one pass: x read once, out written once."""
    x_nat = x_ref[...]
    scale, zero = _minmax_scale_zero(x_nat, maxq=maxq, clip_ratio=clip_ratio, sym=sym)
    x = x_nat.astype(jnp.float32)
    inv = 1.0 / scale
    if sym:
        q = jnp.clip(jnp.round(x * inv), -(maxq + 1.0), maxq)
        deq = scale * q
    else:
        q = jnp.clip(jnp.round(x * inv) + zero, 0.0, maxq)
        deq = scale * (q - zero)
    out_ref[...] = deq.astype(out_ref.dtype)
    scale_ref[...] = scale
    zero_ref[...] = zero


# ------------------------------- module port --------------------------------
class ActQuantizer:
    """JAX/Pallas port of fake_quant.quant_utils.ActQuantizer (per-token)."""

    def __init__(self):
        # maxq / clip_ratio kept as Python scalars (no device sync, jit-safe).
        self.maxq = 0
        self.scale = jnp.zeros((1, 1), dtype=jnp.float32)
        self.zero = jnp.zeros((1, 1), dtype=jnp.float32)
        self.bits = 16
        self.sym = False
        self.groupsize = -1
        self.clip_ratio = 1.0

    def free(self):
        self.scale = None
        self.zero = None

    def configure(self, bits, groupsize=-1, sym=False, clip_ratio=1.0):
        assert 0.0 < clip_ratio <= 1.0, "Clip ratio should be in (0, 1]"
        self.maxq = (2 ** (bits - 1) - 1) if sym else (2 ** bits - 1)
        self.bits = bits
        self.groupsize = groupsize
        self.sym = sym
        self.clip_ratio = float(clip_ratio)

    # ---- find_params: per-token (groupsize <= 0) ---------------------------
    def find_params(self, x):
        if self.bits == 16:
            return
        # TODO(synk): groupwise (find_params_per_token_groupwise) and
        # per-tensor (find_params_per_tensor) paths are not ported.
        assert self.groupsize <= 0, "only per-token (groupsize=-1) supported"
        x2 = x.reshape(-1, x.shape[-1])
        n, h = x2.shape
        isz = jnp.dtype(x2.dtype).itemsize
        align = _row_align(isz)
        # double-buffered x row + compact f32 scale/zero rows (negligible)
        live_bytes_per_row = 2 * h * isz + 64
        tr = _choose_row_tile(n, live_bytes_per_row, align)
        grid = (pl.cdiv(n, tr),)

        kernel = functools.partial(
            _find_params_kernel,
            maxq=float(self.maxq),
            clip_ratio=self.clip_ratio,
            sym=self.sym,
        )
        scale, zero = pl.pallas_call(
            kernel,
            out_shape=(
                jax.ShapeDtypeStruct((n, 1), jnp.float32),
                jax.ShapeDtypeStruct((n, 1), jnp.float32),
            ),
            grid_spec=pltpu.PrefetchScalarGridSpec(
                num_scalar_prefetch=0,
                grid=grid,
                in_specs=[pl.BlockSpec((tr, h), lambda i: (i, 0))],
                out_specs=[
                    pl.BlockSpec((tr, 1), lambda i: (i, 0)),
                    pl.BlockSpec((tr, 1), lambda i: (i, 0)),
                ],
            ),
            compiler_params=_cparams(),
        )(x2)
        # Stored compactly as (tokens, 1). (The PyTorch module repeats them to
        # the full activation shape; the forward result is identical.)
        self.scale = scale
        self.zero = zero

    # ---- forward: fake quant-dequant (uses stored per-token params) --------
    def __call__(self, x):
        if self.bits == 16:
            return x
        x_dtype = x.dtype
        init_shape = x.shape
        x2 = x.reshape(-1, x.shape[-1])
        n, h = x2.shape
        isz = jnp.dtype(x2.dtype).itemsize
        osz = jnp.dtype(x_dtype).itemsize
        align = _row_align(min(isz, osz))
        # double-buffered x + out rows, plus f32 working copies of the
        # elementwise chain, plus compact scale/zero (negligible).
        live_bytes_per_row = 2 * h * isz + 2 * h * osz + 2 * h * 4 + 32
        tr = _choose_row_tile(n, live_bytes_per_row, align)
        grid = (pl.cdiv(n, tr),)

        row_spec = pl.BlockSpec((tr, h), lambda i: (i, 0))
        tok_spec = pl.BlockSpec((tr, 1), lambda i: (i, 0))
        s2 = self.scale.reshape(n, 1)
        # TODO(synk): could set input_output_aliases={0: 0} when caller donates x.

        if self.sym:
            kernel = functools.partial(_fake_quant_sym_kernel, maxq=float(self.maxq))
            out = pl.pallas_call(
                kernel,
                out_shape=jax.ShapeDtypeStruct((n, h), x_dtype),
                grid_spec=pltpu.PrefetchScalarGridSpec(
                    num_scalar_prefetch=0,
                    grid=grid,
                    in_specs=[row_spec, tok_spec],
                    out_specs=row_spec,
                ),
                compiler_params=_cparams(),
            )(x2, s2)
        else:
            z2 = self.zero.reshape(n, 1)
            kernel = functools.partial(_fake_quant_asym_kernel, maxq=float(self.maxq))
            out = pl.pallas_call(
                kernel,
                out_shape=jax.ShapeDtypeStruct((n, h), x_dtype),
                grid_spec=pltpu.PrefetchScalarGridSpec(
                    num_scalar_prefetch=0,
                    grid=grid,
                    in_specs=[row_spec, tok_spec, tok_spec],
                    out_specs=row_spec,
                ),
                compiler_params=_cparams(),
            )(x2, s2, z2)
        return out.reshape(init_shape)

    # ---- fused path: find_params + forward in a single HBM pass ------------
    # Preferred entry point: 2 x-sized HBM passes vs 3 for find_params+__call__.
    def find_params_and_forward(self, x):
        if self.bits == 16:
            return x
        assert self.groupsize <= 0, "only per-token (groupsize=-1) supported"
        x_dtype = x.dtype
        init_shape = x.shape
        x2 = x.reshape(-1, x.shape[-1])
        n, h = x2.shape
        isz = jnp.dtype(x2.dtype).itemsize
        osz = jnp.dtype(x_dtype).itemsize
        align = _row_align(min(isz, osz))
        live_bytes_per_row = 2 * h * isz + 2 * h * osz + 2 * h * 4 + 64
        tr = _choose_row_tile(n, live_bytes_per_row, align)
        grid = (pl.cdiv(n, tr),)

        row_spec = pl.BlockSpec((tr, h), lambda i: (i, 0))
        tok_spec = pl.BlockSpec((tr, 1), lambda i: (i, 0))
        kernel = functools.partial(
            _fused_quant_kernel,
            maxq=float(self.maxq),
            clip_ratio=self.clip_ratio,
            sym=self.sym,
        )
        out, scale, zero = pl.pallas_call(
            kernel,
            out_shape=(
                jax.ShapeDtypeStruct((n, h), x_dtype),
                jax.ShapeDtypeStruct((n, 1), jnp.float32),
                jax.ShapeDtypeStruct((n, 1), jnp.float32),
            ),
            grid_spec=pltpu.PrefetchScalarGridSpec(
                num_scalar_prefetch=0,
                grid=grid,
                in_specs=[row_spec],
                out_specs=[row_spec, tok_spec, tok_spec],
            ),
            compiler_params=_cparams(),
        )(x2)
        self.scale = scale
        self.zero = zero
        return out.reshape(init_shape)

    # TODO(synk): quantize() (integer q output) is not ported; only the
    # fake quant-dequant forward is implemented.


# ----------------------------------------------------------------------------
# Pure-JAX reference (mirrors the PyTorch code path) for validation.
# Uses the same reciprocal-multiply formulation as the kernel (bit-identical;
# differs from a literal x/scale only at exact rounding-tie boundaries).
# ----------------------------------------------------------------------------
def _ref_quant_dequant(x, bits, sym, clip_ratio):
    if bits == 16:
        return x
    maxq = float(2 ** (bits - 1) - 1 if sym else 2 ** bits - 1)
    init_shape = x.shape
    x2 = x.reshape(-1, x.shape[-1]).astype(jnp.float32)
    xmin = jnp.minimum(x2.min(axis=1, keepdims=True), 0.0) * clip_ratio
    xmax = jnp.maximum(x2.max(axis=1, keepdims=True), 0.0) * clip_ratio
    if sym:
        xmax = jnp.maximum(jnp.abs(xmin), xmax)
        scale = jnp.where(xmax == 0.0, 1.0, xmax / maxq)
        inv = 1.0 / scale
        q = jnp.clip(jnp.round(x2 * inv), -(maxq + 1.0), maxq)
        out = scale * q
    else:
        both = (xmin == 0.0) & (xmax == 0.0)
        xmin = jnp.where(both, -1.0, xmin)
        xmax = jnp.where(both, 1.0, xmax)
        scale = (xmax - xmin) / maxq
        zero = jnp.round(-xmin / scale)
        inv = 1.0 / scale
        q = jnp.clip(jnp.round(x2 * inv) + zero, 0.0, maxq)
        out = scale * (q - zero)
    return out.reshape(init_shape).astype(x.dtype)


if __name__ == "__main__":
    key = jax.random.PRNGKey(0)
    x = jax.random.normal(key, (2, 8, 32), dtype=jnp.float32)  # (batch, seq, hidden)

    # Case 1: default bits=16 -> identity forward.
    q16 = ActQuantizer()
    y16 = jax.block_until_ready(q16(x))
    assert jnp.allclose(y16, x)

    # Case 2: asymmetric 4-bit per-token fake quantization.
    qa = ActQuantizer()
    qa.configure(bits=4, groupsize=-1, sym=False, clip_ratio=1.0)
    qa.find_params(x)
    ya = jax.block_until_ready(qa(x))
    ref_a = _ref_quant_dequant(x, bits=4, sym=False, clip_ratio=1.0)
    assert jnp.allclose(ya, ref_a, atol=1e-5, rtol=1e-5), "asym mismatch"
    # Fused single-pass path matches the two-pass path.
    ya_fused = jax.block_until_ready(qa.find_params_and_forward(x))
    assert jnp.allclose(ya_fused, ref_a, atol=1e-5, rtol=1e-5), "fused asym mismatch"

    # Case 3: symmetric 4-bit per-token fake quantization.
    qs = ActQuantizer()
    qs.configure(bits=4, groupsize=-1, sym=True, clip_ratio=1.0)
    qs.find_params(x)
    ys = jax.block_until_ready(qs(x))
    ref_s = _ref_quant_dequant(x, bits=4, sym=True, clip_ratio=1.0)
    assert jnp.allclose(ys, ref_s, atol=1e-5, rtol=1e-5), "sym mismatch"
    ys_fused = jax.block_until_ready(qs.find_params_and_forward(x))
    assert jnp.allclose(ys_fused, ref_s, atol=1e-5, rtol=1e-5), "fused sym mismatch"

    # Case 4: ragged token count (n=15, not a multiple of the row tile)
    # exercises the partial (masked) final block — no wrapper-side padding.
    xr = jax.random.normal(jax.random.PRNGKey(1), (3, 5, 32), dtype=jnp.float32)
    qr = ActQuantizer()
    qr.configure(bits=8, groupsize=-1, sym=False, clip_ratio=0.9)
    qr.find_params(xr)
    yr = jax.block_until_ready(qr(xr))
    ref_r = _ref_quant_dequant(xr, bits=8, sym=False, clip_ratio=0.9)
    assert jnp.allclose(yr, ref_r, atol=1e-5, rtol=1e-5), "ragged mismatch"
    yr_fused = jax.block_until_ready(qr.find_params_and_forward(xr))
    assert jnp.allclose(yr_fused, ref_r, atol=1e-5, rtol=1e-5), "ragged fused mismatch"

    # Case 5: bf16 activations (16-row sublane alignment, native-dtype min/max).
    xb = jax.random.normal(jax.random.PRNGKey(2), (2, 8, 32), dtype=jnp.bfloat16)
    qb = ActQuantizer()
    qb.configure(bits=4, groupsize=-1, sym=True, clip_ratio=1.0)
    yb = jax.block_until_ready(qb.find_params_and_forward(xb))
    ref_b = _ref_quant_dequant(xb, bits=4, sym=True, clip_ratio=1.0)
    assert jnp.allclose(
        yb.astype(jnp.float32), ref_b.astype(jnp.float32), atol=2e-2, rtol=2e-2
    ), "bf16 mismatch"

    print("KERNEL_OK")
</pallas_src>

<mosaic_0001>
module attributes {stable_mosaic.version = 11 : i64} {
  func.func @_find_params_kernel(%arg0: i32, %arg1: memref<8x32xf32, #tpu.memory_space<vmem>>, %arg2: memref<8x1xf32, #tpu.memory_space<vmem>>, %arg3: memref<8x1xf32, #tpu.memory_space<vmem>>) attributes {dimension_semantics = [#tpu.dimension_semantics<parallel>], iteration_bounds = array<i64: 2>, scalar_prefetch = 0 : i64, scratch_operands = 0 : i64, tpu.core_type = #tpu.core_type<tc>, window_params = [{transform_indices = @transform_0, window_bounds = array<i64: 8, 32>}, {transform_indices = @transform_1, window_bounds = array<i64: 8, 1>}, {transform_indices = @transform_2, window_bounds = array<i64: 8, 1>}]} {
    %c0 = arith.constant 0 : index
    %c0_0 = arith.constant 0 : index
    %0 = vector.load %arg1[%c0, %c0_0] : memref<8x32xf32, #tpu.memory_space<vmem>>, vector<8x32xf32>
    %cst = arith.constant dense<0x7F800000> : vector<8xf32>
    %1 = vector.multi_reduction <minimumf>, %0, %cst [1] : vector<8x32xf32> to vector<8xf32>
    %2 = vector.shape_cast %1 : vector<8xf32> to vector<8x1xf32>
    %cst_1 = arith.constant dense<0xFF800000> : vector<8xf32>
    %3 = vector.multi_reduction <maximumf>, %0, %cst_1 [1] : vector<8x32xf32> to vector<8xf32>
    %4 = vector.shape_cast %3 : vector<8xf32> to vector<8x1xf32>
    %cst_2 = arith.constant 0.000000e+00 : f32
    %5 = vector.broadcast %cst_2 : f32 to vector<8x1xf32>
    %6 = arith.minimumf %2, %5 : vector<8x1xf32>
    %cst_3 = arith.constant 1.000000e+00 : f32
    %7 = vector.broadcast %cst_3 : f32 to vector<8x1xf32>
    %8 = arith.mulf %6, %7 : vector<8x1xf32>
    %cst_4 = arith.constant 0.000000e+00 : f32
    %9 = vector.broadcast %cst_4 : f32 to vector<8x1xf32>
    %10 = arith.maximumf %4, %9 : vector<8x1xf32>
    %cst_5 = arith.constant 1.000000e+00 : f32
    %11 = vector.broadcast %cst_5 : f32 to vector<8x1xf32>
    %12 = arith.mulf %10, %11 : vector<8x1xf32>
    %cst_6 = arith.constant 0.000000e+00 : f32
    %13 = vector.broadcast %cst_6 : f32 to vector<8x1xf32>
    %14 = arith.cmpf oeq, %8, %13 : vector<8x1xf32>
    %cst_7 = arith.constant 0.000000e+00 : f32
    %15 = vector.broadcast %cst_7 : f32 to vector<8x1xf32>
    %16 = arith.cmpf oeq, %12, %15 : vector<8x1xf32>
    %17 = arith.andi %14, %16 : vector<8x1xi1>
    %cst_8 = arith.constant -1.000000e+00 : f32
    %18 = vector.broadcast %cst_8 : f32 to vector<8x1xf32>
    %19 = arith.select %17, %18, %8 : vector<8x1xi1>, vector<8x1xf32>
    %cst_9 = arith.constant 1.000000e+00 : f32
    %20 = vector.broadcast %cst_9 : f32 to vector<8x1xf32>
    %21 = arith.select %17, %20, %12 : vector<8x1xi1>, vector<8x1xf32>
    %22 = arith.subf %21, %19 : vector<8x1xf32>
    %cst_10 = arith.constant 1.500000e+01 : f32
    %23 = vector.broadcast %cst_10 : f32 to vector<8x1xf32>
    %24 = arith.divf %22, %23 : vector<8x1xf32>
    %cst_11 = arith.constant 0.000000e+00 : f32
    %25 = vector.broadcast %cst_11 : f32 to vector<8x1xf32>
    %26 = arith.subf %25, %19 : vector<8x1xf32>
    %27 = arith.divf %26, %24 : vector<8x1xf32>
    %28 = math.roundeven %27 : vector<8x1xf32>
    %c0_12 = arith.constant 0 : index
    %c0_13 = arith.constant 0 : index
    %29 = vector.load %arg2[%c0_12, %c0_13] : memref<8x1xf32, #tpu.memory_space<vmem>>, vector<8x1xf32>
    tpu.vector_store %arg2[%c0_12, %c0_13], %24 {strides = array<i32>} : memref<8x1xf32, #tpu.memory_space<vmem>>, vector<8x1xf32>,
    %c0_14 = arith.constant 0 : index
    %c0_15 = arith.constant 0 : index
    %30 = vector.load %arg3[%c0_14, %c0_15] : memref<8x1xf32, #tpu.memory_space<vmem>>, vector<8x1xf32>
    tpu.vector_store %arg3[%c0_14, %c0_15], %28 {strides = array<i32>} : memref<8x1xf32, #tpu.memory_space<vmem>>, vector<8x1xf32>,
    return
  }
  func.func @transform_0(%arg0: i32) -> (i32, i32) {
    %c0_i32 = arith.constant 0 : i32
    %c0_i32_0 = arith.constant 0 : i32
    return %arg0, %c0_i32 : i32, i32
  }
  func.func @transform_1(%arg0: i32) -> (i32, i32) {
    %c0_i32 = arith.constant 0 : i32
    %c0_i32_0 = arith.constant 0 : i32
    return %arg0, %c0_i32 : i32, i32
  }
  func.func @transform_2(%arg0: i32) -> (i32, i32) {
    %c0_i32 = arith.constant 0 : i32
    %c0_i32_0 = arith.constant 0 : i32
    return %arg0, %c0_i32 : i32, i32
  }
}

</mosaic_0001>

<bundles_post_ra>
// kernel: tpu_custom_call.1
= control target key start
LH: loop header
LB: loop body
LE: loop exit
PB: predicated region body
PF: predicated region fallthrough
CT: control target
= control target key end

     0   :  { %8 = vsyncpa [#allocation3], 0  ;;  %s563_s0 = inlined_call_operand.hbm [shape: f32[16,32], index: 0, kind: input, shape index: {}]   ;;  %s564_s1 = inlined_call_operand.vmem [shape: f32[16,1], index: 1, kind: output, shape index: {0}]   ;;  %s565_s2 = inlined_call_operand.vmem [shape: f32[16,1], index: 2, kind: output, shape index: {1}]  }
   0x1   :  { %10 = vsyncpa [#allocation3 + $0x1], 0  ;;  %s457_s9 = smov 0   ;;  %s459_s10 = smov 0  }
   0x2   :  { %s461_s11 = smov 0   ;;  %s463_s12 = smov 0  }
   0x3 LB: > { %s476_s13 = sadd.s32 4294967295, %s439_s12   ;;  %s479_s14 = sadd.s32 1, %s439_s12   ;;  %s439_s12 = sphi %s463_s12, %s572_s12   ;;  %s435_s11 = sphi %s461_s11, %s571_s11   ;;  %s431_s10 = sphi %s459_s10, %s570_s10   ;;  %s427_s9 = sphi %s457_s9, %s569_s9  }
   0x4   : > { %s20_s15 = ssub.s32 %s439_s12, %s479_s14  ;;  %s23_s16 = sadd.s32 1, %s435_s11 }
   0x5   : > { %p21_p0 = scmp.eq.s32.totalorder %s20_s15, 0  ;;  %p30_p1 = scmp.ne.s32.totalorder %s435_s11, %s431_s10 }
   0x6   : > { %p31_p2 = scmp.eq.s32.totalorder %s439_s12, 0  ;;  %p36_p3 = scmp.ne.s32.totalorder %s431_s10, %s427_s9 }
   0x7   : > { %s489_s17 = scalar_select %p21_p0, %s435_s11, %s23_s16  }
   0x8   : > { %p491_p4 = por %p31_p2, %p30_p1  ;;  %p37_p5 = scmp.eq.s32.totalorder %s476_s13, 0 }
   0x9   : > { %p337_p6 = scmp.lt.s32.totalorder %s439_s12, 2  ;;  %s112_s20 = sand.u32 1, %s435_s11  }
   0xa   : > { %p497_p7 = por %p37_p5, %p36_p3  ;;  %s315_s21 = sshll.u32 %s112_s20, 3 }
   0xb   : > { %s316_s22 = sshll.u32 %s439_s12, 3  ;;  %s116_s26 = scalar_lea.vmem [#allocation2], %s315_s21 }
   0xc   : > { %s120_s25 = scalar_lea.hbm %s563_s0, %s316_s22  ;;  %s124_s27 = sshll.u32 %s116_s26, 4  ;;  %s125_s27 = int_to_ptr.vmem [resolvable:$true] %s124_s27 }
   0xd   : > { %s122_s28 = sshll.u32 %s120_s25, 4  ;;  %p508_p8 = pnand %p337_p6, %p491_p4  ;;  %s123_s28 = int_to_ptr.hbm [resolvable:$true] %s122_s28 }
   0xe   : > { %p317_p9 = scmp.ge.s32.totalorder %s439_s12, 1  ;;  %p129_p10 = scmp.lt.s32.totalorder %s439_s12, 3 }
   0xf   : > { %s113_s30 = scalar_lea.sflag [#allocation3], %s112_s20  ;;  %s375_s3 = sshra.s32 %s123_s28, 4  ;;  %s376_s3 = int_to_ptr.hbm [resolvable:$true] %s375_s3 }
  0x10   : > { %s377_s4 = scalar_lea.hbm %s376_s3, 8  ;;  %p379_p12 = pneg %p508_p8 }
  0x11   : > { %p378_p11 = scmp.ne.s32.totalorder %s376_s3, %s377_s4  ;;  %s382_s7 = scalar_lea.hbm %s563_s0, 16 }
  0x12   : > { %p383_p1 = scmp.lt.s32.totalorder %s376_s3, %s563_s0  ;;  %p384_p2 = scmp.lt.s32.totalorder %s382_s7, %s377_s4 }
  0x13   : > { %p380_p13 = pnand %p379_p12, %p378_p11 }
  0x14   : > { %p385_p3 = por %p384_p2, %p383_p1 }
  0x15   : > { %p381_p0 = pneg %p380_p13 }
  0x17   : > { %p386_p4 = pnand %p385_p3, %p381_p0 }
  0x19   : > { %389 = shalt.err (!%p386_p4)
}
  0x1a   : > { %336 = dma.hbm_to_vmem [thread:$0]  (!%p508_p8), %s123_s28, 128, %s125_s27, %s113_s30  }
  0x1b   : > { %p130_p5 = pnand %p317_p9, %p129_p10 }
  0x1c   : > { %s135_s15 = sand.u32 (!%p130_p5), 1, %s431_s10  }
  0x1d   : > { %133 = sbr.rel (%p130_p5) target bundleno = 199 (0xc7), region = 24  ;;  %s318_s16 = sshll.u32 (!%p130_p5), %s135_s15, 3 }
  0x1e   : > { %s136_s18 = scalar_lea.sflag (!%p130_p5), [#allocation3], %s135_s15  ;;  %s139_s20 = scalar_lea.vmem (!%p130_p5), [#allocation2], %s318_s16 }
  0x22   : > { %422 = dma.done.wait (%p497_p7), %s136_s18, 128  }
  0x23   : > { %424 = vsyncadd (%p497_p7), %s136_s18, 4294967168  ;;  %vm173_vm0 = vcmask 261120   ;;  %v172_v0 = vld [vmem:[%s139_s20] sm:$0xff]  ;;  %v441_v3 = vmov 15.0   ;;  %p164_p6 = scmp.lt.s32.totalorder %s476_s13, 1  ;;  %vm213_vm5 = vcmask 7168  }
  0x24   : > { %v174_v1 = vsel %vm173_vm0, %v172_v0, inf  ;;  %v177_v2 = vsel %vm173_vm0, %v172_v0, -inf  ;;  %371 = vrcp.f32 %v441_v3 }
  0x25   : > { %175 = vmin.xlane.f32.xlu0 %v174_v1  ;;  %s574_s13 = smov (!%p164_p6, %s476_s13), 1 }
  0x26   : > { %s319_s12 = sshll.u32 %s574_s13, 3 }
  0x27   : > { %s167_s22 = scalar_lea.vmem %s564_s1, %s319_s12  ;;  %s171_s25 = scalar_lea.vmem %s565_s2, %s319_s12 }
  0x2a   : > { %v372_v4 = vpop.eup %371 }
  0x2b   : > { %v189_v5 = vmul.f32 15.0, %v372_v4  ;;  %vm193_vm1 = vweird.f32 %v372_v4 }
  0x2d   : > { %178 = vmax.xlane.f32.xlu0 %v177_v2  ;;  %v190_v7 = vsub.f32 1.0, %v189_v5 }
  0x2f   : > { %v191_v8 = vmul.f32 %v372_v4, %v190_v7 }
  0x31   : > { %v192_v11 = vadd.f32 %v372_v4, %v191_v8 }
  0x33   : > { %v194_v13 = vsel %vm193_vm1, %v372_v4, %v192_v11 }
  0x98   : > { %v176_v6 = vpop.xlane.xlu0 %175 }
  0x99   : > { %v180_v9 = vmin.f32 %v176_v6, 0.0 }
  0x9b   : > { %vm182_vm2 = vcmp.eq.f32.partialorder %v180_v9, 0.0 }
  0xa0   : > { %v179_v10 = vpop.xlane.xlu0 %178 }
  0xa1   : > { %v181_v12 = vmax.f32 %v179_v10, 0.0 }
  0xa3   : > { %vm183_vm3 = vcmp.eq.f32.partialorder %v181_v12, 0.0 }
  0xa4   : > { %vm184_vm4 = vmand %vm182_vm2, %vm183_vm3 }
  0xa5   : > { %v185_v14 = vsel %vm184_vm4, -1.0, %v180_v9  ;;  %v186_v15 = vsel %vm184_vm4, 1.0, %v181_v12 }
  0xa6   : > { %v187_v16 = vsub.f32 %v186_v15, %v185_v14  ;;  %v196_v26 = vsub.f32 0.0, %v185_v14 }
  0xa8   : > { %v195_v17 = vmul.f32 %v194_v13, %v187_v16 }
  0xaa   : > { %373 = vrcp.f32 %v195_v17  ;;  %214 = vst.msk [vmem:[%s167_s22] sm:$0xff] %vm213_vm5, %v195_v17  ;;  %v208_v21 = vand.u32 2147483648, %v195_v17  ;;  %v206_v23 = vand.u32 2147483647, %v195_v17  ;;  %vm202_vm7 = vweird.f32 %v195_v17 }
  0xac   : > { %v209_v25 = vor.u32 1.1754944e-38, %v208_v21  ;;  %vm207_vm9 = vcmp.eq.f32.partialorder %v206_v23, 8.507059e+37 }
  0xb0   : > { %v374_v18 = vpop.eup %373 }
  0xb1   : > { %v198_v19 = vmul.f32 %v374_v18, %v195_v17  ;;  %vm203_vm6 = vweird.f32 %v374_v18 }
  0xb2   : > { %vm204_vm8 = vmor %vm202_vm7, %vm203_vm6 }
  0xb3   : > { %v199_v20 = vsub.f32 1.0, %v198_v19 }
  0xb5   : > { %v200_v22 = vmul.f32 %v374_v18, %v199_v20 }
  0xb7   : > { %v201_v24 = vadd.f32 %v374_v18, %v200_v22 }
  0xb9   : > { %v205_v27 = vsel %vm204_vm8, %v374_v18, %v201_v24 }
  0xba   : > { %v210_v28 = vsel %vm207_vm9, %v209_v25, %v205_v27 }
  0xbb   : > { %v211_v29 = vmul.f32 %v210_v28, %v196_v26 }
  0xbd   : > { %v325_v30 = vcvt.f32.s32 %v211_v29  ;;  %v323_v32 = vand.u32 2147483647, %v211_v29  ;;  %v328_v34 = vand.u32 2147483648, %v211_v29 }
  0xbf   : > { %v326_v31 = vcvt.s32.f32 %v325_v30  ;;  %vm324_vm10 = vcmp.lt.f32.partialorder %v323_v32, 8388608.0 }
  0xc1   : > { %v327_v33 = vand.u32 2147483647, %v326_v31 }
  0xc3   : > { %v329_v35 = vor.u32 %v328_v34, %v327_v33 }
  0xc5   : > { %v330_v36 = vsel %vm324_vm10, %v329_v35, %v211_v29 }
  0xc6   : > { %215 = vst.msk [vmem:[%s171_s25] sm:$0xff] %vm213_vm5, %v330_v36 }
  0xc7 PF: > { %p13_p7 = scmp.ge.s32.totalorder %s479_s14, 4   ;;  %s569_s9 = smov %s431_s10 }
  0xc8   : > { %s570_s10 = smov %s435_s11  ;;  %s571_s11 = smov %s489_s17 }
  0xc9   : > { %s572_s12 = smov %s479_s14  ;;  %15 = sbr.rel (!%p13_p7) target bundleno = 3 (0x3), region = 76 }
  0xce   :  { %249 = vsyncpa [#allocation3], 1 }
  0xcf   :  { %251 = vsyncpa [#allocation3 + $0x1], 1 }

</bundles_post_ra>
